<compile_context>
chip_gen: v5e
topology: v5e:2x2
jax: 0.10.0
libtpu: 0.0.40
codegen_flags: <defaults>
</compile_context>

<pallas_src>
import functools

import jax
import jax.numpy as jnp
from jax import lax
from jax.experimental import pallas as pl
from jax.experimental.pallas import tpu as pltpu


def value_mlp_kernel(x_ref, w1_ref, b1_ref, w2_ref, b2_ref, w3_ref, b3_ref,
                     o_ref, *, chunk):
    # x_ref: [D, TB] bf16 (batch on lanes); o_ref: [1, TB] f32.
    w1 = w1_ref[...]   # [H, D] bf16
    b1 = b1_ref[...]   # [H, 1] f32
    w2 = w2_ref[...]   # [H, H] bf16
    b2 = b2_ref[...]   # [H, 1] f32
    w3 = w3_ref[...]   # [O, H] bf16
    b3 = b3_ref[...]   # [O, 1] f32

    n_chunks = x_ref.shape[1] // chunk

    def body(c, carry):
        start = pl.multiple_of(c * chunk, chunk)
        x = x_ref[:, pl.ds(start, chunk)]                               # [D, C] bf16

        h1 = jnp.dot(w1, x, preferred_element_type=jnp.float32) + b1    # [H, C] f32
        h1 = jnp.maximum(h1, 0.0).astype(jnp.bfloat16)

        h2 = jnp.dot(w2, h1, preferred_element_type=jnp.float32) + b2   # [H, C] f32
        h2 = jnp.maximum(h2, 0.0).astype(jnp.bfloat16)

        out = jnp.dot(w3, h2, preferred_element_type=jnp.float32) + b3  # [O, C] f32
        o_ref[:, pl.ds(start, chunk)] = out
        return carry

    lax.fori_loop(0, n_chunks, body, 0)


def _choose_chunk(tb):
    for c in (512, 256, 128):
        if tb % c == 0:
            return c
    return 128


def value_network_forward(states, params, tile_b=16384):
    """states: [B, state_dim] float32 -> values: [B, 1] float32."""
    w1, b1, w2, b2, w3, b3 = params   # weights [out, in], biases [out, 1], all f32
    B, D = states.shape
    H = w1.shape[0]          # 64
    O = w3.shape[0]          # 1

    # ---- batch tile selection (multiple of 128) -------------------------------
    TB = min(tile_b, ((B + 127) // 128) * 128)
    TB = max(128, (TB // 128) * 128)
    # Ensure >= 2 grid steps for larger batches so the parallel grid axis can
    # actually shard across both TensorCores on v7x (no-op on v5e/v6e).
    if B > 256 and pl.cdiv(B, TB) < 2:
        TB = max(128, ((pl.cdiv(B, 2) + 127) // 128) * 128)
    num_tiles = pl.cdiv(B, TB)
    B_pad = num_tiles * TB
    chunk = _choose_chunk(TB)

    # ---- host-side input prep --------------------------------------------------
    # Stream the input as bf16 with batch on the lane axis. Padded tail columns
    # are zeros and get sliced off after the call.
    # TODO(synk): in a real PPO pipeline the producer should hand states over
    # already in [D, B] (bf16) layout so this transpose/pad HBM pass disappears.
    x_t = jnp.pad(states.astype(jnp.bfloat16).T, ((0, 0), (0, B_pad - B)))

    w1b = w1.astype(jnp.bfloat16)
    w2b = w2.astype(jnp.bfloat16)
    w3b = w3.astype(jnp.bfloat16)

    resident = lambda shape: pl.BlockSpec(shape, lambda i: (0, 0))

    # VMEM budget: double-buffered bf16 input tile + f32 output tile, tiny
    # resident weights, chunked f32 intermediates, plus headroom. Clamp to a
    # range that is safe on all of v5e (16 MiB default scoped) / v6e / v7x
    # (64 MiB physical).
    vmem_bytes = (
        2 * (D * TB * 2 + O * TB * 4)
        + 4 * (H * D * 2 + H * H * 2 + O * H * 2 + (2 * H + O) * 4)
        + 8 * (H * chunk * 4)
        + (4 << 20)
    )
    vmem_limit = int(min(48 << 20, max(16 << 20, vmem_bytes)))

    kernel = functools.partial(value_mlp_kernel, chunk=chunk)

    out_t = pl.pallas_call(
        kernel,
        out_shape=jax.ShapeDtypeStruct((O, B_pad), jnp.float32),
        grid=(num_tiles,),
        in_specs=[
            pl.BlockSpec((D, TB), lambda i: (0, i)),   # pipelined input stream
            resident((H, D)), resident((H, 1)),        # W1, b1 (stay in VMEM)
            resident((H, H)), resident((H, 1)),        # W2, b2
            resident((O, H)), resident((O, 1)),        # W3, b3
        ],
        out_specs=pl.BlockSpec((O, TB), lambda i: (0, i)),
        compiler_params=pltpu.CompilerParams(
            dimension_semantics=("parallel",),
            vmem_limit_bytes=vmem_limit,
        ),
    )(x_t, w1b, b1, w2b, b2, w3b, b3)

    # [O, B_pad] -> [B, O]
    return out_t[:, :B].T


def init_params(key, state_dim, hidden=64, out_dim=1):
    """Deterministic init mimicking PyTorch nn.Linear default
    (U(-1/sqrt(fan_in), 1/sqrt(fan_in))). Weights stored [out, in], biases [out, 1]."""
    ks = jax.random.split(key, 6)

    def linear(kw, kb, fan_in, fan_out):
        bound = 1.0 / jnp.sqrt(jnp.float32(fan_in))
        w = jax.random.uniform(kw, (fan_out, fan_in), jnp.float32, -bound, bound)
        b = jax.random.uniform(kb, (fan_out, 1), jnp.float32, -bound, bound)
        return w, b

    w1, b1 = linear(ks[0], ks[1], state_dim, hidden)
    w2, b2 = linear(ks[2], ks[3], hidden, hidden)
    w3, b3 = linear(ks[4], ks[5], hidden, out_dim)
    return (w1, b1, w2, b2, w3, b3)


def value_network_ref(states, params):
    """Pure-f32 reference matching the PyTorch module."""
    w1, b1, w2, b2, w3, b3 = params
    h1 = jnp.maximum(states @ w1.T + b1.T, 0.0)
    h2 = jnp.maximum(h1 @ w2.T + b2.T, 0.0)
    return h2 @ w3.T + b3.T


if __name__ == "__main__":
    key = jax.random.PRNGKey(0)
    k_x, k_p = jax.random.split(key)

    state_dim = 8          # small state dimension consistent with a PPO value net
    params = init_params(k_p, state_dim)

    # bf16 streamed activations/weights (f32 accumulation) -> loosened tolerance.
    TOL = dict(atol=5e-2, rtol=5e-2)

    # Small batch (single 128-wide tile, single in-kernel chunk).
    states = jax.random.normal(k_x, (8, state_dim), jnp.float32)
    out = jax.block_until_ready(value_network_forward(states, params))
    ref = value_network_ref(states, params)
    assert out.shape == (8, 1), out.shape
    assert jnp.allclose(out, ref, **TOL), "mismatch vs reference (batch=8)"

    # Batch not a multiple of the tile: exercises tail padding + 2-tile split.
    states_300 = jax.random.normal(k_x, (300, state_dim), jnp.float32)
    out_300 = jax.block_until_ready(value_network_forward(states_300, params))
    ref_300 = value_network_ref(states_300, params)
    assert out_300.shape == (300, 1), out_300.shape
    assert jnp.allclose(out_300, ref_300, **TOL), "mismatch vs reference (batch=300)"

    # Larger batch: exercises multi-tile grid + 512-lane in-kernel chunking.
    states_1k = jax.random.normal(k_x, (1000, state_dim), jnp.float32)
    out_1k = jax.block_until_ready(value_network_forward(states_1k, params))
    ref_1k = value_network_ref(states_1k, params)
    assert out_1k.shape == (1000, 1), out_1k.shape
    assert jnp.allclose(out_1k, ref_1k, **TOL), "mismatch vs reference (batch=1000)"

    print("KERNEL_OK")
</pallas_src>

<mosaic_0001>
module attributes {stable_mosaic.version = 11 : i64} {
  func.func @value_mlp_kernel(%arg0: i32, %arg1: memref<8x128xbf16, #tpu.memory_space<vmem>>, %arg2: memref<64x8xbf16, #tpu.memory_space<vmem>>, %arg3: memref<64x1xf32, #tpu.memory_space<vmem>>, %arg4: memref<64x64xbf16, #tpu.memory_space<vmem>>, %arg5: memref<64x1xf32, #tpu.memory_space<vmem>>, %arg6: memref<1x64xbf16, #tpu.memory_space<vmem>>, %arg7: memref<1x1xf32, #tpu.memory_space<vmem>>, %arg8: memref<1x128xf32, #tpu.memory_space<vmem>>) attributes {dimension_semantics = [#tpu.dimension_semantics<parallel>], iteration_bounds = array<i64: 1>, scalar_prefetch = 0 : i64, scratch_operands = 0 : i64, tpu.core_type = #tpu.core_type<tc>, window_params = [{transform_indices = @transform_0, window_bounds = array<i64: 8, 128>}, {pipeline_mode = #tpu.pipeline_mode<synchronous>, transform_indices = @transform_1, window_bounds = array<i64: 64, 8>}, {pipeline_mode = #tpu.pipeline_mode<synchronous>, transform_indices = @transform_2, window_bounds = array<i64: 64, 1>}, {pipeline_mode = #tpu.pipeline_mode<synchronous>, transform_indices = @transform_3, window_bounds = array<i64: 64, 64>}, {pipeline_mode = #tpu.pipeline_mode<synchronous>, transform_indices = @transform_4, window_bounds = array<i64: 64, 1>}, {pipeline_mode = #tpu.pipeline_mode<synchronous>, transform_indices = @transform_5, window_bounds = array<i64: 1, 64>}, {pipeline_mode = #tpu.pipeline_mode<synchronous>, transform_indices = @transform_6, window_bounds = array<i64: 1, 1>}, {transform_indices = @transform_7, window_bounds = array<i64: 1, 128>}]} {
    %c0 = arith.constant 0 : index
    %c0_0 = arith.constant 0 : index
    %0 = vector.load %arg2[%c0, %c0_0] : memref<64x8xbf16, #tpu.memory_space<vmem>>, vector<64x8xbf16>
    %c0_1 = arith.constant 0 : index
    %c0_2 = arith.constant 0 : index
    %1 = vector.load %arg3[%c0_1, %c0_2] : memref<64x1xf32, #tpu.memory_space<vmem>>, vector<64x1xf32>
    %c0_3 = arith.constant 0 : index
    %c0_4 = arith.constant 0 : index
    %2 = vector.load %arg4[%c0_3, %c0_4] : memref<64x64xbf16, #tpu.memory_space<vmem>>, vector<64x64xbf16>
    %c0_5 = arith.constant 0 : index
    %c0_6 = arith.constant 0 : index
    %3 = vector.load %arg5[%c0_5, %c0_6] : memref<64x1xf32, #tpu.memory_space<vmem>>, vector<64x1xf32>
    %c0_7 = arith.constant 0 : index
    %c0_8 = arith.constant 0 : index
    %4 = vector.load %arg6[%c0_7, %c0_8] : memref<1x64xbf16, #tpu.memory_space<vmem>>, vector<1x64xbf16>
    %c0_9 = arith.constant 0 : index
    %c0_10 = arith.constant 0 : index
    %5 = vector.load %arg7[%c0_9, %c0_10] : memref<1x1xf32, #tpu.memory_space<vmem>>, vector<1x1xf32>
    %c0_i32 = arith.constant 0 : i32
    %c128_i32 = arith.constant 128 : i32
    %6 = arith.muli %c0_i32, %c128_i32 : i32
    %7 = tpu.assume_multiple %6, 128 : i32
    %c0_11 = arith.constant 0 : index
    %8 = arith.index_cast %7 : i32 to index
    %9 = vector.load %arg1[%c0_11, %8] : memref<8x128xbf16, #tpu.memory_space<vmem>>, vector<8x128xbf16>
    %cst = arith.constant dense<0.000000e+00> : vector<64x128xf32>
    %10 = tpu.matmul %0, %9, %cst {dimension_numbers = #tpu.dot_dimension_numbers<[1], [0], [0], [1], [0, 0, 1, 1], [], []>} : vector<64x8xbf16>, vector<8x128xbf16>, vector<64x128xf32> -> vector<64x128xf32>
    %11 = vector.broadcast %1 : vector<64x1xf32> to vector<64x128xf32>
    %12 = arith.addf %10, %11 : vector<64x128xf32>
    %cst_12 = arith.constant 0.000000e+00 : f32
    %13 = vector.broadcast %cst_12 : f32 to vector<64x128xf32>
    %14 = arith.maximumf %12, %13 : vector<64x128xf32>
    %15 = arith.truncf %14 : vector<64x128xf32> to vector<64x128xbf16>
    %cst_13 = arith.constant dense<0.000000e+00> : vector<64x128xf32>
    %16 = tpu.matmul %2, %15, %cst_13 {dimension_numbers = #tpu.dot_dimension_numbers<[1], [0], [0], [1], [0, 0, 1, 1], [], []>} : vector<64x64xbf16>, vector<64x128xbf16>, vector<64x128xf32> -> vector<64x128xf32>
    %17 = vector.broadcast %3 : vector<64x1xf32> to vector<64x128xf32>
    %18 = arith.addf %16, %17 : vector<64x128xf32>
    %cst_14 = arith.constant 0.000000e+00 : f32
    %19 = vector.broadcast %cst_14 : f32 to vector<64x128xf32>
    %20 = arith.maximumf %18, %19 : vector<64x128xf32>
    %21 = arith.truncf %20 : vector<64x128xf32> to vector<64x128xbf16>
    %cst_15 = arith.constant dense<0.000000e+00> : vector<1x128xf32>
    %22 = tpu.matmul %4, %21, %cst_15 {dimension_numbers = #tpu.dot_dimension_numbers<[1], [0], [0], [1], [0, 0, 1, 1], [], []>} : vector<1x64xbf16>, vector<64x128xbf16>, vector<1x128xf32> -> vector<1x128xf32>
    %23 = vector.broadcast %5 : vector<1x1xf32> to vector<1x128xf32>
    %24 = arith.addf %22, %23 : vector<1x128xf32>
    %c0_16 = arith.constant 0 : index
    %25 = arith.index_cast %7 : i32 to index
    %26 = vector.load %arg8[%c0_16, %25] : memref<1x128xf32, #tpu.memory_space<vmem>>, vector<1x128xf32>
    tpu.vector_store %arg8[%c0_16, %25], %24 {strides = array<i32>} : memref<1x128xf32, #tpu.memory_space<vmem>>, vector<1x128xf32>,
    %c1_i32 = arith.constant 1 : i32
    return
  }
  func.func @transform_0(%arg0: i32) -> (i32, i32) {
    %c0_i32 = arith.constant 0 : i32
    %c0_i32_0 = arith.constant 0 : i32
    return %c0_i32, %arg0 : i32, i32
  }
  func.func @transform_1(%arg0: i32) -> (i32, i32) {
    %c0_i32 = arith.constant 0 : i32
    %c0_i32_0 = arith.constant 0 : i32
    %c0_i32_1 = arith.constant 0 : i32
    return %c0_i32, %c0_i32_0 : i32, i32
  }
  func.func @transform_2(%arg0: i32) -> (i32, i32) {
    %c0_i32 = arith.constant 0 : i32
    %c0_i32_0 = arith.constant 0 : i32
    %c0_i32_1 = arith.constant 0 : i32
    return %c0_i32, %c0_i32_0 : i32, i32
  }
  func.func @transform_3(%arg0: i32) -> (i32, i32) {
    %c0_i32 = arith.constant 0 : i32
    %c0_i32_0 = arith.constant 0 : i32
    %c0_i32_1 = arith.constant 0 : i32
    return %c0_i32, %c0_i32_0 : i32, i32
  }
  func.func @transform_4(%arg0: i32) -> (i32, i32) {
    %c0_i32 = arith.constant 0 : i32
    %c0_i32_0 = arith.constant 0 : i32
    %c0_i32_1 = arith.constant 0 : i32
    return %c0_i32, %c0_i32_0 : i32, i32
  }
  func.func @transform_5(%arg0: i32) -> (i32, i32) {
    %c0_i32 = arith.constant 0 : i32
    %c0_i32_0 = arith.constant 0 : i32
    %c0_i32_1 = arith.constant 0 : i32
    return %c0_i32, %c0_i32_0 : i32, i32
  }
  func.func @transform_6(%arg0: i32) -> (i32, i32) {
    %c0_i32 = arith.constant 0 : i32
    %c0_i32_0 = arith.constant 0 : i32
    %c0_i32_1 = arith.constant 0 : i32
    return %c0_i32, %c0_i32_0 : i32, i32
  }
  func.func @transform_7(%arg0: i32) -> (i32, i32) {
    %c0_i32 = arith.constant 0 : i32
    %c0_i32_0 = arith.constant 0 : i32
    return %c0_i32, %arg0 : i32, i32
  }
}

</mosaic_0001>

<bundles_post_ra>
// kernel: tpu_custom_call.1
= control target key start
LH: loop header
LB: loop body
LE: loop exit
PB: predicated region body
PF: predicated region fallthrough
CT: control target
= control target key end

     0   :  { %s560_s0 = inlined_call_operand.vmem [shape: bf16[8,128], index: 0, kind: input, shape index: {}]   ;;  %s561_s1 = inlined_call_operand.vmem [shape: bf16[64,8], index: 1, kind: input, shape index: {}]   ;;  %s562_s2 = inlined_call_operand.vmem [shape: f32[64,1], index: 2, kind: input, shape index: {}]   ;;  %s563_s3 = inlined_call_operand.vmem [shape: bf16[64,64], index: 3, kind: input, shape index: {}]   ;;  %s564_s4 = inlined_call_operand.vmem [shape: f32[64,1], index: 4, kind: input, shape index: {}]   ;;  %s565_s5 = inlined_call_operand.vmem [shape: bf16[1,64], index: 5, kind: input, shape index: {}]   ;;  %s566_s6 = inlined_call_operand.<no memory space> [shape: f32[1,1], index: 6, kind: input, shape index: {}]   ;;  %s567_s7 = inlined_call_operand.hbm [shape: f32[1,128], index: 7, kind: output, shape index: {}]  }
   0x1   :  { %v12_v0 = vstv %s566_s6 }
   0x2   :  { %13 = vst [vmem:[#allocation2] sm:$0x1] %v12_v0 }
   0x3   :  { %v64_v1 = vld [vmem:[%s560_s0] sm:$0xf]  ;;  %vm138_vm0 = vcmask 1043456   ;;  %v44_v2 = vld [vmem:[%s562_s2 + $0x30] sm:$0xff]  ;;  %v425_v3 = vmov 0   ;;  %vm125_vm1 = vcmask 64512  }
   0x4   :  { %396 = vset.pattern.permute.xlu0 %v425_v3  ;;  %v140_v4 = vsel %vm138_vm0, %v64_v1, 0  ;;  %v377_v5 = vld [vmem:[%s561_s1] sm:$0xff]  ;;  %397 = vset.pattern.permute.xlu1 %v425_v3  ;;  %v380_v7 = vld [vmem:[%s561_s1 + $0x18] sm:$0xff] }
   0x5   :  { %v42_v6 = vld [vmem:[%s562_s2 + $0x20] sm:$0xff]  ;;  %149 = vmatpush.bf16.msra.mxu0 %v140_v4  ;;  %97 = vperm.xlu0 %396, %v44_v2  }
   0x6   :  { %87 = vperm.xlu1 %397, %v42_v6   ;;  %385 = vmatpush.bf16.msra.mxu1 %v140_v4 }
   0x7   :  { %398 = vset.pattern.permute.xlu2 %v425_v3 }
   0x8   :  { %14 = vsyncpa [#allocation4], 0  ;;  %352 = vmatmul.msk.bf16.vlgmr.msra.gmra.mxu0 %vm125_vm1, %v377_v5  ;;  %v40_v8 = vld [vmem:[%s562_s2 + $0x10] sm:$0xff]  ;;  %v45_v9 = vld [vmem:[%s562_s2 + $0x38] sm:$0xff]  ;;  %vm243_vm2 = vcmask 523264   ;;  %s426_s24 = smov [#allocation3]  }
   0x9   :  { %355 = vmatmul.msk.bf16.vlgmr.msra.gmra.mxu1 %vm125_vm1, %v380_v7  ;;  %77 = vperm.xlu2 %398, %v40_v8   ;;  %v43_v10 = vld [vmem:[%s562_s2 + $0x28] sm:$0xff]  ;;  %v41_v11 = vld [vmem:[%s562_s2 + $0x18] sm:$0xff]  ;;  %v38_v12 = vld [vmem:[%s562_s2] sm:$0xff]  ;;  %s325_s25 = sshll.u32 %s426_s24, 4  ;;  %s327_s28 = sshll.u32 %s567_s7, 4  ;;  %s326_s25 = int_to_ptr.vmem [resolvable:$true] %s325_s25  ;;  %s328_s28 = int_to_ptr.hbm [resolvable:$true] %s327_s28 }
   0xa   :  { %v39_v13 = vld [vmem:[%s562_s2 + $0x8] sm:$0xff]  ;;  %v60_v15 = vld [vmem:[%s564_s4 + $0x30] sm:$0xff]  ;;  %v61_v16 = vld [vmem:[%s564_s4 + $0x38] sm:$0xff] }
   0xb   :  { %v378_v14 = vld [vmem:[%s561_s1 + $0x8] sm:$0xff]  ;;  %v58_v17 = vld [vmem:[%s564_s4 + $0x20] sm:$0xff]  ;;  %v56_v19 = vld [vmem:[%s564_s4 + $0x10] sm:$0xff] }
   0xc   :  { %v59_v18 = vld [vmem:[%s564_s4 + $0x28] sm:$0xff]  ;;  %v57_v20 = vld [vmem:[%s564_s4 + $0x18] sm:$0xff]  ;;  %v379_v21 = vld [vmem:[%s561_s1 + $0x10] sm:$0xff] }
   0xd   :  { %102 = vperm.xlu0 %396, %v45_v9   ;;  %v54_v22 = vld [vmem:[%s564_s4] sm:$0xff]  ;;  %v55_v23 = vld [vmem:[%s564_s4 + $0x8] sm:$0xff]  ;;  %v383_v63 = vld [vmem:[%s563_s3 + $0x10] sm:$0xff] }
   0xe   :  { %92 = vperm.xlu1 %397, %v43_v10   ;;  %v63_v24 = vld [vmem:[#allocation2] sm:$0x1]  ;;  %v382_v62 = vld [vmem:[%s563_s3 + $0x8] sm:$0xff]  ;;  %v384_v0 = vld [vmem:[%s563_s3 + $0x18] sm:$0xff] }
   0xf   :  { %v381_v61 = vld [vmem:[%s563_s3] sm:$0xff] }
  0x11   :  { %82 = vperm.xlu2 %398, %v41_v11  }
  0x15   :  { %67 = vperm.xlu0 %396, %v38_v12  }
  0x16   :  { %72 = vperm.xlu1 %397, %v39_v13  }
  0x18   :  { %353 = vmatmul.msk.bf16.gmra.mxu0 %vm125_vm1, %v378_v14 }
  0x19   :  { %215 = vperm.xlu2 %398, %v60_v15  }
  0x1d   :  { %220 = vperm.xlu0 %396, %v61_v16  }
  0x1e   :  { %205 = vperm.xlu1 %397, %v58_v17  }
  0x21   :  { %210 = vperm.xlu2 %398, %v59_v18  }
  0x25   :  { %195 = vperm.xlu0 %396, %v56_v19  }
  0x26   :  { %200 = vperm.xlu1 %397, %v57_v20  }
  0x28   :  { %354 = vmatmul.msk.bf16.gmra.mxu0 %vm125_vm1, %v379_v21 }
  0x29   :  { %185 = vperm.xlu2 %398, %v54_v22  }
  0x2d   :  { %190 = vperm.xlu0 %396, %v55_v23  }
  0x2e   :  { %299 = vperm.xlu1 %397, %v63_v24  }
  0x63   :  { %v78_v39 = vpop.permute.xlu2 %77 }
  0x6b   :  { %v83_v43 = vpop.permute.xlu2 %82 }
  0x73   :  { %v216_v4 = vpop.permute.xlu2 %215 }
  0x77   :  { %v98_v25 = vpop.permute.xlu0 %97 }
  0x78   :  { %v88_v37 = vpop.permute.xlu1 %87 }
  0x7b   :  { %v211_v11 = vpop.permute.xlu2 %210 }
  0x7f   :  { %v103_v30 = vpop.permute.xlu0 %102 }
  0x80   :  { %v93_v40 = vpop.permute.xlu1 %92 }
  0x85   :  { %v151_v26 = vpop.f32.mrf.mxu0 }
  0x86   :  { %v166_v27 = vpop.f32.mrf.mxu1 }
  0x87   :  { %v167_v28 = vadd.f32 %v166_v27, %v98_v25  ;;  %v68_v51 = vpop.permute.xlu0 %67 }
  0x88   :  { %v73_v47 = vpop.permute.xlu1 %72  ;;  %v152_v55 = vadd.f32 %v151_v26, %v68_v51 }
  0x89   :  { %v177_v32 = vmax.f32 %v167_v28, 0.0 }
  0x8a   :  { %v171_v59 = vmax.f32 %v152_v55, 0.0 }
  0x8d   :  { %v153_v29 = vpop.f32.mrf.mxu0 }
  0x8e   :  { %v168_v31 = vpop.f32.mrf.mxu1  ;;  %v154_v52 = vadd.f32 %v153_v29, %v73_v47 }
  0x8f   :  { %v169_v33 = vadd.f32 %v168_v31, %v103_v30  ;;  %v221_v3 = vpop.permute.xlu0 %220  ;;  %v186_v30 = vpop.permute.xlu2 %185 }
  0x90   :  { %v172_v57 = vmax.f32 %v154_v52, 0.0  ;;  %v206_v7 = vpop.permute.xlu1 %205 }
  0x91   :  { %v178_v34 = vmax.f32 %v169_v33, 0.0 }
  0x92   :  { %v179_v60 = vpack.c.bf16 %v172_v57, %v171_v59 }
  0x93   :  { %v182_v35 = vpack.c.bf16 %v178_v34, %v177_v32 }
  0x95   :  { %v156_v36 = vpop.f32.mrf.mxu0  ;;  %260 = vmatpush.bf16.msrb.mxu1 %v182_v35  ;;  %386 = vmatpush.bf16.msra.mxu2 %v182_v35 }
  0x96   :  { %387 = vmatpush.bf16.msra.mxu3 %v182_v35  ;;  %v157_v48 = vadd.f32 %v156_v36, %v78_v39 }
  0x97   :  { %v196_v9 = vpop.permute.xlu0 %195 }
  0x98   :  { %v173_v56 = vmax.f32 %v157_v48, 0.0  ;;  %v201_v19 = vpop.permute.xlu1 %200 }
  0x9d   :  { %v158_v38 = vpop.f32.mrf.mxu0 }
  0x9e   :  { %v159_v45 = vadd.f32 %v158_v38, %v83_v43 }
  0x9f   :  { %v191_v26 = vpop.permute.xlu0 %190 }
  0xa0   :  { %v174_v53 = vmax.f32 %v159_v45, 0.0  ;;  %v300_v38 = vpop.permute.xlu1 %299 }
  0xa1   :  { %v302_v39 = vperm.slane %v300_v38, 0 }
  0xa2   :  { %v180_v58 = vpack.c.bf16 %v174_v53, %v173_v56 }
  0xa5   :  { %v161_v41 = vpop.f32.mrf.mxu0 }
  0xa6   :  { %v162_v42 = vadd.f32 %v161_v41, %v88_v37  ;;  %v62_v37 = vld [vmem:[%s565_s5] sm:$0x1] }
  0xa8   :  { %v175_v49 = vmax.f32 %v162_v42, 0.0 }
  0xad   :  { %v163_v44 = vpop.f32.mrf.mxu0 }
  0xae   :  { %v164_v46 = vadd.f32 %v163_v44, %v93_v40 }
  0xb0   :  { %v176_v50 = vmax.f32 %v164_v46, 0.0 }
  0xb2   :  { %v181_v54 = vpack.c.bf16 %v176_v50, %v175_v49 }
  0xb4   :  { %261 = vmatpush.bf16.msrb.mxu1 %v181_v54  ;;  %388 = vmatpush.bf16.msra.mxu2 %v181_v54 }
  0xb5   :  { %389 = vmatpush.bf16.msra.mxu3 %v181_v54 }
  0xb8   :  { %262 = vmatpush.bf16.msrb.mxu1 %v180_v58  ;;  %390 = vmatpush.bf16.msra.mxu2 %v180_v58 }
  0xb9   :  { %391 = vmatpush.bf16.msra.mxu3 %v180_v58 }
  0xbc   :  { %263 = vmatpush.bf16.msrb.mxu1 %v179_v60  ;;  %392 = vmatpush.bf16.msra.mxu2 %v179_v60 }
  0xbd   :  { %393 = vmatpush.bf16.msra.mxu3 %v179_v60 }
  0xbf   :  { %372 = vmatmul.msk.bf16.vlgmr.msrb.gmra.mxu1 %vm243_vm2, %v381_v61  ;;  %373 = vmatmul.msk.bf16.vlgmr.msra.gmra.mxu2 %vm243_vm2, %v382_v62 }
  0xc0   :  { %374 = vmatmul.msk.bf16.vlgmr.msra.gmra.mxu3 %vm243_vm2, %v383_v63 }
  0xd0   :  { %375 = vmatmul.msk.bf16.gmra.mxu3 %vm243_vm2, %v384_v0 }
 0x13c   :  { %v265_v8 = vpop.f32.mrf.mxu1 }
 0x13d   :  { %v266_v31 = vadd.f32 %v265_v8, %v186_v30 }
 0x13f   :  { %v285_v35 = vmax.f32 %v266_v31, 0.0 }
 0x142   :  { %v270_v5 = vpop.f32.mrf.mxu2 }
 0x143   :  { %v275_v1 = vpop.f32.mrf.mxu3  ;;  %v271_v24 = vadd.f32 %v270_v5, %v196_v9 }
 0x144   :  { %v276_v16 = vadd.f32 %v275_v1, %v206_v7  ;;  %v267_v23 = vpop.f32.mrf.mxu1 }
 0x145   :  { %v268_v27 = vadd.f32 %v267_v23, %v191_v26  ;;  %v287_v32 = vmax.f32 %v271_v24, 0.0 }
 0x146   :  { %v289_v25 = vmax.f32 %v276_v16, 0.0 }
 0x147   :  { %v286_v33 = vmax.f32 %v268_v27, 0.0 }
 0x149   :  { %v293_v36 = vpack.c.bf16 %v286_v33, %v285_v35 }
 0x14a   :  { %v272_v15 = vpop.f32.mrf.mxu2 }
 0x14b   :  { %v277_v2 = vpop.f32.mrf.mxu3  ;;  %v273_v20 = vadd.f32 %v272_v15, %v201_v19 }
 0x14c   :  { %v278_v13 = vadd.f32 %v277_v2, %v211_v11 }
 0x14d   :  { %v288_v28 = vmax.f32 %v273_v20, 0.0 }
 0x14e   :  { %v290_v21 = vmax.f32 %v278_v13, 0.0 }
 0x14f   :  { %v294_v34 = vpack.c.bf16 %v288_v28, %v287_v32 }
 0x150   :  { %v295_v29 = vpack.c.bf16 %v290_v21, %v289_v25 }
 0x153   :  { %v280_v6 = vpop.f32.mrf.mxu3 }
 0x154   :  { %v281_v10 = vadd.f32 %v280_v6, %v216_v4 }
 0x156   :  { %v291_v17 = vmax.f32 %v281_v10, 0.0 }
 0x15b   :  { %v282_v12 = vpop.f32.mrf.mxu3 }
 0x15c   :  { %v283_v14 = vadd.f32 %v282_v12, %v221_v3 }
 0x15e   :  { %v292_v18 = vmax.f32 %v283_v14, 0.0 }
 0x160   :  { %v296_v22 = vpack.c.bf16 %v292_v18, %v291_v17 }
 0x162   :  { %310 = vmatpush.bf16.msrb.mxu2 %v296_v22 }
 0x166   :  { %311 = vmatpush.bf16.msrb.mxu2 %v295_v29 }
 0x16a   :  { %312 = vmatpush.bf16.msrb.mxu2 %v294_v34 }
 0x16e   :  { %313 = vmatpush.bf16.msrb.mxu2 %v293_v36 }
 0x171   :  { %376 = vmatmul.msk.bf16.vlgmr.msrb.gmra.mxu2 %vm243_vm2, %v62_v37 }
 0x1f4   :  { %v315_v40 = vpop.f32.mrf.mxu2 }
 0x1f5   :  { %v316_v41 = vadd.f32 %v315_v40, %v302_v39 }
 0x1f7   :  { %319 = vst [vmem:[#allocation3] sm:$0x1] %v316_v41 }
 0x1f8   :  { %330 = dma.vmem_to_hbm [thread:$0]  %s326_s25, 16, %s328_s28, [#allocation4]  }
 0x1fc   :  { %v317_v42 = vpop.f32.mrf.mxu2 }
 0x1fd   :  { %423 = dma.done.wait [#allocation4], 16  }
 0x1fe   :  { %424 = vsyncadd [#allocation4], 4294967280 }
 0x1ff   :  { %335 = vsyncpa [#allocation4], 1 }

</bundles_post_ra>
